<compile_context>
chip_gen: v7x
topology: tpu7x:2x2x1
jax: 0.10.0
libtpu: 0.0.40
codegen_flags: <defaults>
</compile_context>

<pallas_src>
import jax
import jax.numpy as jnp
from jax import lax
from jax.experimental import pallas as pl
from jax.experimental.pallas import tpu as pltpu


def _tpu_vmem_info():
    """(vmem_capacity_bytes, lowercase chip-name string) with safe fallbacks."""
    cap = 64 * 1024 * 1024          # conservative default (v7x per-core VMEM)
    name = ""
    try:
        info = pltpu.get_tpu_info()
        cap = int(getattr(info, "vmem_capacity_bytes", cap))
        for attr in ("chip_version", "version", "generation", "chip_name"):
            v = getattr(info, attr, None)
            if v is not None:
                name = str(v).lower()
                break
    except Exception:
        pass
    return cap, name


def position_attention_module(x, wb, bb, wc, bc, wd, bd, alpha, *, tq=None):
    """x: (B, C, H, W); wb/wc: (C//8, C); wd: (C, C); biases 1-D; alpha: (1,)."""
    B, C, H, W = x.shape
    C8 = wb.shape[0]
    HW = H * W
    dt = x.dtype
    itemsize = jnp.dtype(dt).itemsize
    f32 = jnp.float32

    cap, chip = _tpu_vmem_info()

    # --- spatial padding: lane-dense multiple of 128 ------------------------
    HWp = ((HW + 127) // 128) * 128
    pad = HWp - HW

    if tq is None:
        # v6e's 2x256x256 MXU prefers a 256-wide query tile when HW is large
        # and the 128 MiB VMEM holds the extra softmax temps; 128 elsewhere.
        tq = 256 if ("v6" in chip and HWp % 256 == 0 and HWp >= 2048
                     and cap >= 100 * 1024 * 1024) else 128
    if HWp % tq != 0:
        tq = 128
    n_q = HWp // tq

    # --- 1x1 convs hoisted out of the kernel (plain XLA batched matmuls) ----
    xf = x.reshape(B, C, HW)
    if pad:
        xf = jnp.pad(xf, ((0, 0), (0, 0), (0, pad)))

    def conv1x1(w, b):
        y = jnp.einsum("oc,bcm->bom", w.astype(dt), xf,
                       precision=lax.Precision.HIGHEST,
                       preferred_element_type=f32)
        return (y + b.astype(f32)[:, None]).astype(dt)

    fb = conv1x1(wb, bb)          # (B, C8, HWp)
    fc = conv1x1(wc, bc)          # (B, C8, HWp)
    fd = conv1x1(wd, bd)          # (B, C,  HWp)
    alpha = alpha.astype(f32)

    # --- the attention kernel ------------------------------------------------
    def kernel(alpha_ref, fb_ref, fc_ref, fd_ref, x_ref, o_ref):
        cdt = fc_ref.dtype
        # energy[q, k] = sum_c fb[c, q] * fc[c, k]   (contract dim 0 of both)
        energy = lax.dot_general(
            fb_ref[...], fc_ref[...], (((0,), (0,)), ((), ())),
            preferred_element_type=f32)                        # (tq, HWp) f32
        if pad:
            kidx = lax.broadcasted_iota(jnp.int32, energy.shape, 1)
            energy = jnp.where(kidx < HW, energy, -1e30)       # mask padded keys
        m = jnp.max(energy, axis=-1, keepdims=True)            # (tq, 1)
        # exp in the I/O dtype (bf16 on v6e/v7x halves EUP/VPU work; args <= 0)
        p = jnp.exp((energy - m).astype(cdt))                  # (tq, HWp)
        # feat_un[c, q] = sum_k fd[c, k] * p[q, k]   (unnormalized)
        feat_un = lax.dot_general(
            fd_ref[...], p, (((1,), (1,)), ((), ())),
            preferred_element_type=f32)                        # (C, tq)
        # Row sums of p as a (1, tq) lane vector via a tiny ones-matmul so the
        # softmax normalization is applied to C*tq elements, not tq*HWp.
        denom = lax.dot_general(
            jnp.ones((1, p.shape[1]), cdt), p, (((1,), (1,)), ((), ())),
            preferred_element_type=f32)                        # (1, tq)
        scale = alpha_ref[0] * pl.reciprocal(denom, approx=True)
        o_ref[...] = (feat_un * scale
                      + x_ref[...].astype(f32)).astype(o_ref.dtype)

    # --- VMEM footprint / scoped limit ---------------------------------------
    vmem_est = (
        2 * (C8 + C) * HWp * itemsize        # fc, fd slabs (double-buffered)
        + 2 * (C8 + 2 * C) * tq * itemsize   # fb / x / out tiles (double-buffered)
        + tq * HWp * (4 + itemsize)          # energy (f32) + p
        + (C + 16) * tq * 4)                 # feat_un + row stats
    need = int(1.25 * vmem_est) + (2 << 20)
    budget = max(cap - 8 * 1024 * 1024, 16 * 1024 * 1024)   # leave Mosaic headroom
    vmem_limit = None
    if need > 16 * 1024 * 1024:              # v5e default scoped limit is 16 MiB
        vmem_limit = int(min(budget, max(need, 32 * 1024 * 1024)))
    # TODO(synk): if `need` ever exceeds `budget` (very large HW on v7x's 64 MiB),
    # switch to a flash-style key-chunked softmax instead of clamping the limit.

    cost = pl.CostEstimate(
        flops=2 * B * HWp * HWp * (C8 + C + 1),
        transcendentals=B * HWp * HWp,
        bytes_accessed=B * HWp * (2 * C8 + 3 * C) * itemsize + 4)  # incl. output

    out_flat = pl.pallas_call(
        kernel,
        out_shape=jax.ShapeDtypeStruct((B, C, HWp), dt),
        grid_spec=pltpu.PrefetchScalarGridSpec(
            num_scalar_prefetch=0,
            grid=(B, n_q),
            in_specs=[
                pl.BlockSpec(memory_space=pltpu.MemorySpace.SMEM),      # alpha
                pl.BlockSpec((None, C8, tq), lambda b, q: (b, 0, q)),   # fb tile
                pl.BlockSpec((None, C8, HWp), lambda b, q: (b, 0, 0)),  # fc slab
                pl.BlockSpec((None, C, HWp), lambda b, q: (b, 0, 0)),   # fd slab
                pl.BlockSpec((None, C, tq), lambda b, q: (b, 0, q)),    # x tile
            ],
            out_specs=pl.BlockSpec((None, C, tq), lambda b, q: (b, 0, q)),
        ),
        compiler_params=pltpu.CompilerParams(
            dimension_semantics=("parallel", "parallel"),
            vmem_limit_bytes=vmem_limit,
        ),
        cost_estimate=cost,
    )(alpha, fb, fc, fd, xf)

    if pad:
        out_flat = out_flat[:, :, :HW]
    return out_flat.reshape(B, C, H, W)


def _reference(x, wb, bb, wc, bc, wd, bd, alpha):
    """Pure-JAX reference mirroring the PyTorch forward (f32 math)."""
    B, C, H, W = x.shape
    HW = H * W
    f32 = jnp.float32
    hi = lax.Precision.HIGHEST
    xf = x.reshape(B, C, HW).astype(f32)
    fb = jnp.einsum("oc,bcm->bom", wb.astype(f32), xf, precision=hi) + bb.astype(f32)[:, None]
    fc = jnp.einsum("oc,bcm->bom", wc.astype(f32), xf, precision=hi) + bc.astype(f32)[:, None]
    fd = jnp.einsum("oc,bcm->bom", wd.astype(f32), xf, precision=hi) + bd.astype(f32)[:, None]
    energy = jnp.einsum("bcq,bck->bqk", fb, fc, precision=hi)
    s = jax.nn.softmax(energy, axis=-1)
    feat_e = jnp.einsum("bck,bqk->bcq", fd, s, precision=hi)
    out = alpha.astype(f32)[0] * feat_e + xf
    return out.reshape(B, C, H, W)


if __name__ == "__main__":
    def make_inputs(key, B, C, H, W, dtype):
        C8 = C // 8
        ks = jax.random.split(key, 7)
        scale = 1.0 / (C ** 0.5)
        x = jax.random.normal(ks[0], (B, C, H, W), jnp.float32).astype(dtype)
        wb = (jax.random.normal(ks[1], (C8, C), jnp.float32) * scale).astype(dtype)
        wc = (jax.random.normal(ks[2], (C8, C), jnp.float32) * scale).astype(dtype)
        wd = (jax.random.normal(ks[3], (C, C), jnp.float32) * scale).astype(dtype)
        bb = (jax.random.normal(ks[4], (C8,), jnp.float32) * 0.1).astype(dtype)
        bc = (jax.random.normal(ks[5], (C8,), jnp.float32) * 0.1).astype(dtype)
        bd = (jax.random.normal(ks[6], (C,), jnp.float32) * 0.1).astype(dtype)
        return x, wb, bb, wc, bc, wd, bd

    key = jax.random.PRNGKey(0)

    # 1) f32, HW a multiple of 128, alpha = 0 (nn.Parameter(torch.zeros(1)))
    args = make_inputs(key, 2, 32, 16, 16, jnp.float32)
    alpha0 = jnp.zeros((1,), jnp.float32)
    out0 = position_attention_module(*args, alpha0)
    jax.block_until_ready(out0)
    assert jnp.allclose(out0, _reference(*args, alpha0), atol=5e-3, rtol=5e-3)

    # 2) f32, non-zero alpha exercises the attention path
    alpha1 = jnp.full((1,), 0.5, jnp.float32)
    out1 = position_attention_module(*args, alpha1)
    jax.block_until_ready(out1)
    assert jnp.allclose(out1, _reference(*args, alpha1), atol=5e-3, rtol=5e-3)

    # 3) f32, HW NOT a multiple of 128 (12*12=144 -> padded to 256, masked keys)
    argsp = make_inputs(jax.random.PRNGKey(1), 2, 32, 12, 12, jnp.float32)
    alphap = jnp.full((1,), 0.7, jnp.float32)
    outp = position_attention_module(*argsp, alphap)
    jax.block_until_ready(outp)
    assert jnp.allclose(outp, _reference(*argsp, alphap), atol=5e-3, rtol=5e-3)

    # 4) bf16 I/O path (halves HBM/VMEM traffic; accumulation stays f32)
    argsb = tuple(a.astype(jnp.bfloat16) for a in args)
    outb = position_attention_module(*argsb, alpha1)
    jax.block_until_ready(outb)
    refb = _reference(*argsb, alpha1)
    assert jnp.allclose(outb.astype(jnp.float32), refb, atol=1e-1, rtol=1e-1)

    print("KERNEL_OK")
</pallas_src>

<mosaic_0001>
module attributes {stable_mosaic.version = 11 : i64} {
  func.func @kernel(%arg0: i32, %arg1: i32, %arg2: memref<1xf32, #tpu.memory_space<smem>>, %arg3: memref<1x4x128xf32, #tpu.memory_space<vmem>>, %arg4: memref<1x4x256xf32, #tpu.memory_space<vmem>>, %arg5: memref<1x32x256xf32, #tpu.memory_space<vmem>>, %arg6: memref<1x32x128xf32, #tpu.memory_space<vmem>>, %arg7: memref<1x32x128xf32, #tpu.memory_space<vmem>>) attributes {dimension_semantics = [#tpu.dimension_semantics<parallel>, #tpu.dimension_semantics<parallel>], iteration_bounds = array<i64: 2, 2>, scalar_prefetch = 0 : i64, scratch_operands = 0 : i64, tpu.core_type = #tpu.core_type<tc>, window_params = [{transform_indices = @transform_0, window_bounds = array<i64: 1>}, {transform_indices = @transform_1, window_bounds = array<i64: 1, 4, 128>}, {transform_indices = @transform_2, window_bounds = array<i64: 1, 4, 256>}, {transform_indices = @transform_3, window_bounds = array<i64: 1, 32, 256>}, {transform_indices = @transform_4, window_bounds = array<i64: 1, 32, 128>}, {transform_indices = @transform_5, window_bounds = array<i64: 1, 32, 128>}]} {
    %c0 = arith.constant 0 : index
    %c0_0 = arith.constant 0 : index
    %c0_1 = arith.constant 0 : index
    %0 = vector.load %arg3[%c0, %c0_0, %c0_1] : memref<1x4x128xf32, #tpu.memory_space<vmem>>, vector<1x4x128xf32>
    %1 = vector.shape_cast %0 : vector<1x4x128xf32> to vector<4x128xf32>
    %c0_2 = arith.constant 0 : index
    %c0_3 = arith.constant 0 : index
    %c0_4 = arith.constant 0 : index
    %2 = vector.load %arg4[%c0_2, %c0_3, %c0_4] : memref<1x4x256xf32, #tpu.memory_space<vmem>>, vector<1x4x256xf32>
    %3 = vector.shape_cast %2 : vector<1x4x256xf32> to vector<4x256xf32>
    %cst = arith.constant dense<0.000000e+00> : vector<128x256xf32>
    %4 = tpu.matmul %1, %3, %cst {dimension_numbers = #tpu.dot_dimension_numbers<[0], [0], [1], [1], [0, 1, 1, 1], [], []>} : vector<4x128xf32>, vector<4x256xf32>, vector<128x256xf32> -> vector<128x256xf32>
    %cst_5 = arith.constant dense<0xFF800000> : vector<128xf32>
    %5 = vector.multi_reduction <maximumf>, %4, %cst_5 [1] : vector<128x256xf32> to vector<128xf32>
    %6 = vector.shape_cast %5 : vector<128xf32> to vector<128x1xf32>
    %7 = vector.broadcast %6 : vector<128x1xf32> to vector<128x256xf32>
    %8 = arith.subf %4, %7 : vector<128x256xf32>
    %9 = math.exp %8 : vector<128x256xf32>
    %c0_6 = arith.constant 0 : index
    %c0_7 = arith.constant 0 : index
    %c0_8 = arith.constant 0 : index
    %10 = vector.load %arg5[%c0_6, %c0_7, %c0_8] : memref<1x32x256xf32, #tpu.memory_space<vmem>>, vector<1x32x256xf32>
    %11 = vector.shape_cast %10 : vector<1x32x256xf32> to vector<32x256xf32>
    %cst_9 = arith.constant dense<0.000000e+00> : vector<32x128xf32>
    %12 = tpu.matmul %11, %9, %cst_9 {dimension_numbers = #tpu.dot_dimension_numbers<[1], [1], [0], [0], [0, 0, 1, 0], [], []>} : vector<32x256xf32>, vector<128x256xf32>, vector<32x128xf32> -> vector<32x128xf32>
    %cst_10 = arith.constant 1.000000e+00 : f32
    %13 = vector.broadcast %cst_10 : f32 to vector<1x256xf32>
    %cst_11 = arith.constant dense<0.000000e+00> : vector<1x128xf32>
    %14 = tpu.matmul %13, %9, %cst_11 {dimension_numbers = #tpu.dot_dimension_numbers<[1], [1], [0], [0], [0, 0, 1, 0], [], []>} : vector<1x256xf32>, vector<128x256xf32>, vector<1x128xf32> -> vector<1x128xf32>
    %c0_12 = arith.constant 0 : index
    %15 = memref.load %arg2[%c0_12] : memref<1xf32, #tpu.memory_space<smem>>
    %16 = tpu.reciprocal %14 {approx = true} : vector<1x128xf32> -> vector<1x128xf32>
    %17 = vector.broadcast %15 : f32 to vector<1x128xf32>
    %18 = arith.mulf %17, %16 : vector<1x128xf32>
    %19 = vector.broadcast %18 : vector<1x128xf32> to vector<32x128xf32>
    %20 = arith.mulf %12, %19 : vector<32x128xf32>
    %c0_13 = arith.constant 0 : index
    %c0_14 = arith.constant 0 : index
    %c0_15 = arith.constant 0 : index
    %21 = vector.load %arg6[%c0_13, %c0_14, %c0_15] : memref<1x32x128xf32, #tpu.memory_space<vmem>>, vector<1x32x128xf32>
    %22 = vector.shape_cast %21 : vector<1x32x128xf32> to vector<32x128xf32>
    %23 = arith.addf %20, %22 : vector<32x128xf32>
    %c0_16 = arith.constant 0 : index
    %c0_17 = arith.constant 0 : index
    %c0_18 = arith.constant 0 : index
    %24 = vector.load %arg7[%c0_16, %c0_17, %c0_18] : memref<1x32x128xf32, #tpu.memory_space<vmem>>, vector<1x32x128xf32>
    %25 = vector.shape_cast %24 : vector<1x32x128xf32> to vector<32x128xf32>
    %26 = vector.shape_cast %23 : vector<32x128xf32> to vector<1x32x128xf32>
    tpu.vector_store %arg7[%c0_16, %c0_17, %c0_18], %26 {strides = array<i32>} : memref<1x32x128xf32, #tpu.memory_space<vmem>>, vector<1x32x128xf32>,
    return
  }
  func.func @transform_0(%arg0: i32, %arg1: i32) -> i32 {
    %c0_i32 = arith.constant 0 : i32
    %c0_i32_0 = arith.constant 0 : i32
    return %c0_i32 : i32
  }
  func.func @transform_1(%arg0: i32, %arg1: i32) -> (i32, i32, i32) {
    %c0_i32 = arith.constant 0 : i32
    %c0_i32_0 = arith.constant 0 : i32
    return %arg0, %c0_i32, %arg1 : i32, i32, i32
  }
  func.func @transform_2(%arg0: i32, %arg1: i32) -> (i32, i32, i32) {
    %c0_i32 = arith.constant 0 : i32
    %c0_i32_0 = arith.constant 0 : i32
    %c0_i32_1 = arith.constant 0 : i32
    return %arg0, %c0_i32, %c0_i32_0 : i32, i32, i32
  }
  func.func @transform_3(%arg0: i32, %arg1: i32) -> (i32, i32, i32) {
    %c0_i32 = arith.constant 0 : i32
    %c0_i32_0 = arith.constant 0 : i32
    %c0_i32_1 = arith.constant 0 : i32
    return %arg0, %c0_i32, %c0_i32_0 : i32, i32, i32
  }
  func.func @transform_4(%arg0: i32, %arg1: i32) -> (i32, i32, i32) {
    %c0_i32 = arith.constant 0 : i32
    %c0_i32_0 = arith.constant 0 : i32
    return %arg0, %c0_i32, %arg1 : i32, i32, i32
  }
  func.func @transform_5(%arg0: i32, %arg1: i32) -> (i32, i32, i32) {
    %c0_i32 = arith.constant 0 : i32
    %c0_i32_0 = arith.constant 0 : i32
    return %arg0, %c0_i32, %arg1 : i32, i32, i32
  }
}

</mosaic_0001>

<bundles_post_ra>
// kernel: tpu_custom_call.1
= control target key start
LH: loop header
LB: loop body
LE: loop exit
PB: predicated region body
PF: predicated region fallthrough
CT: control target
= control target key end

     0   :  { %s2287_s0 = inlined_call_operand.<no memory space> [shape: f32[1], index: 0, kind: input, shape index: {}]   ;;  %s2288_s1 = inlined_call_operand.hbm [shape: f32[2,4,256], index: 1, kind: input, shape index: {}]   ;;  %s2289_s2 = inlined_call_operand.hbm [shape: f32[2,4,256], index: 2, kind: input, shape index: {}]   ;;  %s2290_s3 = inlined_call_operand.hbm [shape: f32[2,32,256], index: 3, kind: input, shape index: {}]   ;;  %s2291_s4 = inlined_call_operand.hbm [shape: f32[2,32,256], index: 4, kind: input, shape index: {}]   ;;  %s2292_s5 = inlined_call_operand.hbm [shape: f32[2,32,256], index: 5, kind: output, shape index: {}]  }
   0x1   :  { %2310 = sst [smem:[#allocation24_spill]] %s2288_s1 }
   0x2   :  { %2311 = sst [smem:[#allocation25_spill]] %s2289_s2 }
   0x3   :  { %2312 = sst [smem:[#allocation26_spill]] %s2292_s5 }
   0x4   :  { %10 = sst [smem:[#allocation2]] %s2287_s0 }
   0x5   :  { %11 = vsyncpa [#allocation4], 0 }
   0x6   :  { %13 = vsyncpa [#allocation4 + $0x1], 0 }
   0x7   :  { %14 = vsyncpa [#allocation7], 0 }
   0x8   :  { %16 = vsyncpa [#allocation7 + $0x1], 0 }
   0x9   :  { %17 = vsyncpa [#allocation10], 0 }
   0xa   :  { %19 = vsyncpa [#allocation10 + $0x1], 0 }
   0xb   :  { %20 = vsyncpa [#allocation5], 0 }
   0xc   :  { %22 = vsyncpa [#allocation5 + $0x1], 0  ;;  %s1733_s20 = smov 0   ;;  %s1735_s21 = smov 0  }
   0xd   :  { %s1737_s22 = smov 0   ;;  %s1739_s23 = smov 0  }
   0xe   :  { %s1741_s24 = smov 0   ;;  %s1743_s25 = smov 0  }
   0xf   :  { %s1745_s0 = smov 0   ;;  %s1747_s26 = smov 0  }
  0x10   :  { %s1749_s27 = smov 0   ;;  %s1751_s28 = smov 0  }
  0x11   :  { %s1753_s29 = smov 0  }
  0x12 LB: > { %2313 = sst [smem:[#allocation16_spill]] %s1648_s21  ;;  %s1787_s30 = sadd.s32 4294967295, %s1684_s29   ;;  %s1684_s29 = sphi %s1753_s29, %s28_s29   ;;  %s1680_s28 = sphi %s1751_s28, %s2364_s28   ;;  %s1676_s27 = sphi %s1749_s27, %s2363_s27   ;;  %s1672_s26 = sphi %s1747_s26, %s2362_s26   ;;  %s1668_s0 = sphi %s1745_s0, %s2361_s0   ;;  %s1664_s25 = sphi %s1743_s25, %s2360_s25   ;;  %s1660_s24 = sphi %s1741_s24, %s2359_s24   ;;  %s1656_s23 = sphi %s1739_s23, %s2358_s23   ;;  %s1652_s22 = sphi %s1737_s22, %s2357_s22   ;;  %s1648_s21 = sphi %s1735_s21, %s2356_s21   ;;  %s1644_s20 = sphi %s1733_s20, %s2353_s20  }
  0x13   : > { %2314 = sst [smem:[#allocation17_spill]] %s1656_s23  ;;  %p2295_p0 = scmp.eq.s32.totalorder %s1684_s29, 0 }
  0x14   : > { %2315 = sst [smem:[#allocation18_spill]] %s1668_s0  ;;  %p2294_p1 = scmp.eq.s32.totalorder %s1787_s30, 0 }
  0x15   : > { %2316 = sst [smem:[#allocation19_spill]] %s1672_s26  ;;  %p103_p2 = scmp.ne.s32.totalorder %s1652_s22, %s1648_s21 }
  0x16   : > { %p109_p3 = scmp.ne.s32.totalorder %s1648_s21, %s1644_s20  ;;  %p2293_p4 = scmp.lt.s32.totalorder %s1684_s29, 4 }
  0x17   : > { %p105_p5 = por %p103_p2, %p2295_p0  ;;  %s238_s8 = sand.u32 1, %s1684_s29  }
  0x18   : > { %p1800_p6 = por %p109_p3, %p2294_p1  ;;  %s240_s9 = sand.u32 1, %s1652_s22  }
  0x19   : > { %s1137_s10 = sshll.u32 %s240_s9, 3  ;;  %s1175_s11 = sshll.u32 %s1680_s28, 7 }
  0x1a   : > { %s2317_s7 = scalar_select %p1800_p6, 1, 0 }
  0x1b   : > { %s2319_s2 = sld [smem:[#allocation25_spill]]  ;;  %s242_s15 = scalar_lea.vmem [#allocation6], %s1137_s10 }
  0x1c   : > { %2318 = sst [smem:[#allocation20_spill]] %s2317_s7  ;;  %s250_s16 = sshll.u32 %s242_s15, 4  ;;  %s1812_s16 = int_to_ptr.vmem [resolvable:$true] %s250_s16 }
  0x1d   : > { %p1816_p7 = pnand %p2293_p4, %p105_p5  ;;  %s1820_s18 = sshll.u32 %s240_s9, 6 }
  0x1e   : > { %s1823_s19 = scalar_lea.sflag [#allocation7], %s238_s8 }
  0x1f   : > { %p2296_p10 = pneg %p1816_p7 }
  0x21   : > { %s1810_s14 = scalar_lea.hbm %s2319_s2, %s1175_s11  ;;  %s1439_s12 = scalar_lea.hbm %s2319_s2, 256 }
  0x22   : > { %s1434_s20 = scalar_lea.hbm %s1810_s14, 128  ;;  %p1440_p13 = scmp.lt.u32.totalorder %s1810_s14, %s2319_s2 }
  0x23   : > { %p1435_p9 = scmp.ne.s32.totalorder %s1810_s14, %s1434_s20  ;;  %p1441_p2 = scmp.lt.u32.totalorder %s1439_s12, %s1434_s20 }
  0x24   : > { %p1443_p5 = scmp.lt.u32.totalorder %s1434_s20, %s1810_s14 }
  0x25   : > { %p1437_p11 = pnand %p2296_p10, %p1435_p9  ;;  %p1442_p3 = por %p1441_p2, %p1440_p13 }
  0x27   : > { %p1438_p12 = pneg %p1437_p11  ;;  %p1444_p4 = por %p1443_p5, %p1442_p3 }
  0x29   : > { %p1445_p1 = pnand %p1444_p4, %p1438_p12 }
  0x2b   : > { %1448 = shalt.err (!%p1445_p1)
}
  0x2c   : > { %s1449_s8 = scalar_lea.vmem %s1812_s16, 128  ;;  %s1686_s9 = smov [#allocation6]  }
  0x2d   : > { %p1450_p9 = scmp.ne.s32.totalorder %s1812_s16, %s1449_s8  ;;  %s1454_s10 = sshll.u32 %s1686_s9, 4  ;;  %s1455_s10 = int_to_ptr.vmem [resolvable:$false] %s1454_s10 }
  0x2e   : > { %s1456_s11 = scalar_lea.vmem %s1455_s10, 256  ;;  %p1457_p8 = scmp.lt.s32.totalorder %s1812_s16, %s1455_s10 }
  0x2f   : > { %p1452_p11 = pnand %p1450_p9, %p2296_p10  ;;  %p1458_p13 = scmp.lt.s32.totalorder %s1456_s11, %s1449_s8 }
  0x31   : > { %p1453_p0 = pneg %p1452_p11  ;;  %p1459_p2 = por %p1458_p13, %p1457_p8 }
  0x33   : > { %p1460_p3 = pnand %p1459_p2, %p1453_p0 }
  0x35   : > { %1463 = shalt.err (!%p1460_p3)
}
  0x36   : > { %1257 = dma.hbm_to_vmem [thread:$0]  (!%p1816_p7), %s1810_s14, 128, %s1812_s16, %s1823_s19  }
  0x37   : > { %s261_s20 = scalar_lea.vmem [#allocation8], %s1820_s18  ;;  %p298_p0 = scmp.lt.s32.totalorder %s1684_s29, 5 }
  0x38   : > { %s268_s12 = sshll.u32 %s261_s20, 4  ;;  %p2321_p1 = scmp.ge.s32.totalorder %s1684_s29, 1  ;;  %s1853_s12 = int_to_ptr.vmem [resolvable:$true] %s268_s12 }
  0x39   : > { %s1131_s15 = sadd.s32 4294967294, %s1684_s29   ;;  %s37_s8 = sadd.s32 1, %s1676_s27 }
  0x3a   : > { %p1857_p4 = pnand %p2321_p1, %p298_p0  ;;  %p38_p8 = scmp.ge.s32.totalorder %s37_s8, 2 }
  0x3b   : > { %s40_s9 = sadd.s32 1, %s1680_s28  ;;  %s70_s14 = sadd.s32 1, %s1664_s25 }
  0x3c   : > { %s2322_s13 = scalar_select %p1857_p4, 1, 0 }
  0x3d   : > { %p77_p12 = scmp.ne.s32.totalorder %s1664_s25, %s1660_s24  ;;  %s2366_s8 = smov (%p38_p8, %s37_s8), 0 }
  0x3e   : > { %2323 = sst [smem:[#allocation21_spill]] %s2366_s8  ;;  %s2368_s9 = smov (!%p38_p8, %s40_s9), %s1680_s28 }
  0x3f   : > { %s66_s16 = ssub.s32 %s1676_s27, %s2366_s8  ;;  %p2324_p5 = scmp.eq.s32.totalorder %s1684_s29, 0 }
  0x40   : > { %p42_p11 = scmp.ge.s32.totalorder %s2368_s9, 2  ;;  %p83_p13 = scmp.ne.s32.totalorder %s1660_s24, %s1656_s23 }
  0x41   : > { %p1874_p9 = por %p2324_p5, %p77_p12  ;;  %p189_p2 = scmp.eq.s32.totalorder %s1787_s30, 3 }
  0x42   : > { %p195_p3 = scmp.eq.s32.totalorder %s1131_s15, 3  ;;  %s2370_s9 = smov (%p42_p11, %s2368_s9), 0 }
  0x43   : > { %2326 = sst [smem:[#allocation22_spill]] %s2370_s9  ;;  %p2327_p0 = scmp.eq.s32.totalorder %s1787_s30, 0 }
  0x44   : > { %p1889_p8 = por %p189_p2, %p77_p12  ;;  %s65_s20 = ssub.s32 %s1680_s28, %s2370_s9 }
  0x45   : > { %p1885_p1 = por %p2327_p0, %p83_p13  ;;  %p1895_p5 = por %p195_p3, %p83_p13 }
  0x46   : > { %s2329_s11 = scalar_select %p1889_p8, 1, 0 }
  0x47   : > { %s2328_s10 = scalar_select %p1885_p1, 1, 0 }
  0x48   : > { %2330 = sst [smem:[#allocation23_spill]] %s2329_s11  ;;  %s67_s15 = sor.u32 %s66_s16, %s65_s20 }
  0x49   : > { %s2331_s6 = scalar_select %p1895_p5, 1, 0 }
  0x4a   : > { %p94_p11 = scmp.eq.s32.totalorder %s65_s20, 0  ;;  %p68_p10 = scmp.eq.s32.totalorder %s67_s15, 0 }
  0x4b   : > { %s1900_s2 = sand.u32 1, %s1664_s25   ;;  %s2332_s8 = sadd.s32 1, %s1652_s22 }
  0x4c   : > { %s1905_s23 = scalar_select %p94_p11, %s1652_s22, %s2332_s8  }
  0x4d   : > { %s1908_s5 = scalar_select %p68_p10, %s1664_s25, %s70_s14  }
  0x4e   : > { %s1134_s9 = sshll.u32 %s1900_s2, 2  ;;  %s1135_s11 = sshll.u32 %s1680_s28, 1 }
  0x4f   : > { %s227_s0 = sadd.s32 %s1676_s27, %s1135_s11  ;;  %s222_s26 = scalar_lea.vmem [#allocation3], %s1134_s9 }
  0x50   : > { %s231_s7 = sshll.u32 %s222_s26, 4  ;;  %s1136_s21 = sshll.u32 %s227_s0, 6  ;;  %s1913_s7 = int_to_ptr.vmem [resolvable:$true] %s231_s7 }
  0x51   : > { %s2333_s1 = sld [smem:[#allocation24_spill]]  ;;  %p2334_p12 = scmp.lt.s32.totalorder %s1684_s29, 4 }
  0x52   : > { %s219_s26 = scalar_lea.sflag [#allocation4], %s1900_s2 }
  0x53   : > { %p1924_p10 = pnand %p2334_p12, %p1874_p9 }
  0x55   : > { %p2309_p2 = pneg %p1924_p10 }
  0x57   : > { %s1918_s15 = scalar_lea.hbm %s2333_s1, %s1136_s21  ;;  %s1469_s18 = scalar_lea.hbm %s2333_s1, 256 }
  0x58   : > { %s1464_s9 = scalar_lea.hbm %s1918_s15, 64  ;;  %p1470_p9 = scmp.lt.u32.totalorder %s1918_s15, %s2333_s1 }
  0x59   : > { %p1465_p13 = scmp.ne.s32.totalorder %s1918_s15, %s1464_s9  ;;  %p1471_p11 = scmp.lt.u32.totalorder %s1469_s18, %s1464_s9 }
  0x5a   : > { %p1473_p5 = scmp.lt.u32.totalorder %s1464_s9, %s1918_s15 }
  0x5b   : > { %p1467_p3 = pnand %p2309_p2, %p1465_p13  ;;  %p1472_p12 = por %p1471_p11, %p1470_p9 }
  0x5d   : > { %p1468_p0 = pneg %p1467_p3  ;;  %p1474_p8 = por %p1473_p5, %p1472_p12 }
  0x5f   : > { %p1475_p6 = pnand %p1474_p8, %p1468_p0 }
  0x61   : > { %1478 = shalt.err (!%p1475_p6)
}
  0x62   : > { %s1479_s20 = scalar_lea.vmem %s1913_s7, 64  ;;  %s1687_s21 = smov [#allocation3]  }
  0x63   : > { %p1480_p13 = scmp.ne.s32.totalorder %s1913_s7, %s1479_s20  ;;  %s1484_s14 = sshll.u32 %s1687_s21, 4  ;;  %s1485_s14 = int_to_ptr.vmem [resolvable:$false] %s1484_s14 }
  0x64   : > { %s1486_s11 = scalar_lea.vmem %s1485_s14, 128  ;;  %p1487_p4 = scmp.lt.s32.totalorder %s1913_s7, %s1485_s14 }
  0x65   : > { %p1482_p3 = pnand %p1480_p13, %p2309_p2  ;;  %p1488_p9 = scmp.lt.s32.totalorder %s1486_s11, %s1479_s20 }
  0x67   : > { %p1483_p1 = pneg %p1482_p3  ;;  %p1489_p11 = por %p1488_p9, %p1487_p4 }
  0x69   : > { %p1490_p5 = pnand %p1489_p11, %p1483_p1 }
  0x6b   : > { %1493 = shalt.err (!%p1490_p5)
}
  0x6c   : > { %1254 = dma.hbm_to_vmem [thread:$0]  (!%p1924_p10), %s1918_s15, 64, %s1913_s7, %s219_s26  }
  0x6d   : > { %s1144_s9 = sshll.u32 %s1680_s28, 3  ;;  %s1176_s18 = sshll.u32 %s1680_s28, 10 }
  0x6e   : > { %s1958_s16 = sadd.s32 %s1676_s27, %s1144_s9  ;;  %s1963_s20 = scalar_lea.hbm %s2290_s3, %s1176_s18 }
  0x6f   : > { %s1494_s14 = scalar_lea.hbm %s1963_s20, 1024  ;;  %p2336_p4 = pneg %p1816_p7 }
  0x70   : > { %p1495_p6 = scmp.ne.s32.totalorder %s1963_s20, %s1494_s14  ;;  %s1499_s26 = scalar_lea.hbm %s2290_s3, 2048 }
  0x71   : > { %p1500_p0 = scmp.lt.u32.totalorder %s1963_s20, %s2290_s3  ;;  %p1501_p12 = scmp.lt.u32.totalorder %s1499_s26, %s1494_s14 }
  0x72   : > { %p1497_p1 = pnand %p1495_p6, %p2336_p4  ;;  %p1503_p3 = scmp.lt.u32.totalorder %s1494_s14, %s1963_s20 }
  0x73   : > { %p1502_p13 = por %p1501_p12, %p1500_p0 }
  0x74   : > { %p1498_p8 = pneg %p1497_p1 }
  0x75   : > { %p1504_p9 = por %p1503_p3, %p1502_p13 }
  0x77   : > { %p1505_p11 = pnand %p1504_p9, %p1498_p8 }
  0x79   : > { %1508 = shalt.err (!%p1505_p11)
}
  0x7a   : > { %s1509_s0 = scalar_lea.vmem %s1853_s12, 1024  ;;  %p2337_p6 = pmov %p2336_p4 }
  0x7b   : > { %p1510_p5 = scmp.ne.s32.totalorder %s1853_s12, %s1509_s0  ;;  %s1688_s18 = smov [#allocation8]  }
  0x7c   : > { %s1514_s21 = sshll.u32 %s1688_s18, 4  ;;  %s1515_s21 = int_to_ptr.vmem [resolvable:$false] %s1514_s21 }
  0x7d   : > { %p1512_p4 = pnand %p1510_p5, %p2337_p6  ;;  %s1516_s7 = scalar_lea.vmem %s1515_s21, 2048 }
  0x7e   : > { %p1517_p2 = scmp.lt.s32.totalorder %s1853_s12, %s1515_s21  ;;  %p1518_p0 = scmp.lt.s32.totalorder %s1516_s7, %s1509_s0 }
  0x7f   : > { %p1513_p1 = pneg %p1512_p4 }
  0x80   : > { %p1519_p12 = por %p1518_p0, %p1517_p2 }
  0x82   : > { %p1520_p13 = pnand %p1519_p12, %p1513_p1 }
  0x84   : > { %1523 = shalt.err (!%p1520_p13)
}
  0x85   : > { %s1689_s14 = smov 256   ;;  %s1690_s15 = smov 16  }
  0x86   : > { %1260 = dma.hbm_to_vmem [thread:$0]  (!%p1816_p7), %s1963_s20, 1024, %s1853_s12, %s1823_s19, %s1689_s14, %s1689_s14, %s1690_s15  }
  0x87   : > { %s1145_s26 = sshll.u32 %s1958_s16, 7  ;;  %s2338_s11 = sshll.u32 %s1900_s2, 5 }
  0x88   : > { %s282_s9 = scalar_lea.vmem [#allocation9], %s2338_s11  ;;  %s1997_s7 = scalar_lea.hbm %s2291_s4, %s1145_s26 }
  0x89   : > { %s290_s0 = sshll.u32 %s282_s9, 4  ;;  %s279_s1 = scalar_lea.sflag [#allocation10], %s1900_s2  ;;  %s1999_s0 = int_to_ptr.vmem [resolvable:$true] %s290_s0 }
  0x8a   : > { %s1524_s17 = scalar_lea.hbm %s1997_s7, 512  ;;  %p2339_p7 = pneg %p1924_p10 }
  0x8b   : > { %p1525_p2 = scmp.ne.s32.totalorder %s1997_s7, %s1524_s17  ;;  %s1529_s16 = scalar_lea.hbm %s2291_s4, 2048 }
  0x8c   : > { %p1530_p9 = scmp.lt.u32.totalorder %s1997_s7, %s2291_s4  ;;  %p1531_p11 = scmp.lt.u32.totalorder %s1529_s16, %s1524_s17 }
  0x8d   : > { %p1527_p8 = pnand %p1525_p2, %p2339_p7  ;;  %p1533_p6 = scmp.lt.u32.totalorder %s1524_s17, %s1997_s7 }
  0x8e   : > { %p1532_p5 = por %p1531_p11, %p1530_p9 }
  0x8f   : > { %p1528_p3 = pneg %p1527_p8 }
  0x90   : > { %p1534_p4 = por %p1533_p6, %p1532_p5 }
  0x92   : > { %p1535_p1 = pnand %p1534_p4, %p1528_p3 }
  0x94   : > { %1538 = shalt.err (!%p1535_p1)
}
  0x95   : > { %s1539_s26 = scalar_lea.vmem %s1999_s0, 512  ;;  %p2340_p12 = pmov %p2339_p7 }
  0x96   : > { %p1540_p0 = scmp.ne.s32.totalorder %s1999_s0, %s1539_s26  ;;  %s1691_s11 = smov [#allocation9]  }
  0x97   : > { %s1544_s9 = sshll.u32 %s1691_s11, 4  ;;  %s1545_s9 = int_to_ptr.vmem [resolvable:$false] %s1544_s9 }
  0x98   : > { %p1542_p13 = pnand %p1540_p0, %p2340_p12  ;;  %s1546_s18 = scalar_lea.vmem %s1545_s9, 1024 }
  0x99   : > { %p1547_p7 = scmp.lt.s32.totalorder %s1999_s0, %s1545_s9  ;;  %p1548_p8 = scmp.lt.s32.totalorder %s1546_s18, %s1539_s26 }
  0x9a   : > { %p1543_p2 = pneg %p1542_p13 }
  0x9b   : > { %p1549_p9 = por %p1548_p8, %p1547_p7 }
  0x9d   : > { %p1550_p11 = pnand %p1549_p9, %p1543_p2 }
  0x9f   : > { %1553 = shalt.err (!%p1550_p11)
}
  0xa0   : > { %s1692_s21 = smov 128   ;;  %s1693_s17 = smov 8  }
  0xa1   : > { %1263 = dma.hbm_to_vmem [thread:$0]  (!%p1924_p10), %s1997_s7, 512, %s1999_s0, %s279_s1, %s1689_s14, %s1692_s21, %s1693_s17  }
  0xa2   : > { %p2341_p3 = scmp.ne.s32.totalorder %s2322_s13, 0 }
  0xa3   : > { %s2031_s19 = sand.u32 (!%p2341_p3), 1, %s1660_s24   ;;  %p2342_p5 = scmp.ne.s32.totalorder (!%p2341_p3), %s2328_s10, 0 }
  0xa4   : > { %302 = sbr.rel (%p2341_p3) target bundleno = 1007 (0x3ef), region = 40  ;;  %s1147_s12 = sshll.u32 (!%p2341_p3), %s2031_s19, 2 }
  0xa5   : > { %s305_s16 = scalar_lea.sflag (!%p2341_p3), [#allocation4], %s2031_s19  ;;  %s308_s20 = scalar_lea.vmem (!%p2341_p3), [#allocation3], %s1147_s12 }
  0xab   : > { %1627 = dma.done.wait (%p2342_p5), %s305_s16, 64  }
  0xac   : > { %1629 = vsyncadd (%p2342_p5), %s305_s16, 4294967232  ;;  %s2343_s2 = sld [smem:[#allocation16_spill]]  ;;  %s2344_s1 = sld [smem:[#allocation20_spill]] }
  0xad   : > { %s313_s8 = sand.u32 1, %s1787_s30  }
  0xae   : > { %s314_s0 = scalar_lea.sflag [#allocation7], %s313_s8 }
  0xb2   : > { %s315_s13 = sand.u32 1, %s2343_s2   ;;  %p2345_p10 = scmp.ne.s32.totalorder %s2344_s1, 0 }
  0xb3   : > { %s1148_s14 = sshll.u32 %s315_s13, 3 }
  0xb4   : > { %s317_s7 = scalar_lea.vmem [#allocation6], %s1148_s14 }
  0xb5   : > { %1631 = dma.done.wait (%p2345_p10), %s314_s0, 1152  }
  0xb6   : > { %1633 = vsyncadd (%p2345_p10), %s314_s0, 4294966144  ;;  %s1149_s15 = sshll.u32 %s315_s13, 6  ;;  %s1150_s26 = sshll.u32 %s2031_s19, 5 }
  0xb7   : > { %s2046_s11 = scalar_lea.vmem [#allocation8], %s1149_s15  ;;  %s332_s9 = scalar_lea.sflag [#allocation10], %s2031_s19 }
  0xb8   : > { %s2051_s30 = scalar_lea.vmem [#allocation9], %s1150_s26 }
  0xb9   : > { %1635 = dma.done.wait (%p2342_p5), %s332_s9, 512  }
  0xba   : > { %1637 = vsyncadd (%p2342_p5), %s332_s9, 4294966784  ;;  %v1694_v0 = vmov 0.0   ;;  %v377_v1 = vld [vmem:[%s308_s20] sm:$0xf]  ;;  %v378_v2 = vld [vmem:[%s317_s7] sm:$0xff]  ;;  %vm462_vm0 = vcmask 1043456  }
  0xbb   : > { %531 = vmatprep.mubr.f32.mxu0 %v1694_v0  ;;  %379 = vxpose.xlu0.b32.start.end [1/1] (short) %v377_v1, 128  ;;  %v412_v3 = vcombine.high %v378_v2, %v378_v2  ;;  %vm413_vm1 = vcmask 31744   ;;  %s2346_s10 = sld [smem:[#allocation19_spill]]  ;;  %s2347_s18 = sld [smem:[#allocation18_spill]] }
  0xbc   : > { %s935_s21 = sld [smem:[#allocation2]]  ;;  %s376_s16 = scalar_lea.vmem [#allocation11], %s1150_s26 }
  0xbd   : > { %1152 = vmatprep.subr.msk.mxu0 %vm462_vm0, %v412_v3  ;;  %s974_s20 = sshll.u32 %s376_s16, 4  ;;  %s2348_s1 = sld [smem:[#allocation23_spill]]  ;;  %s2219_s20 = int_to_ptr.vmem [resolvable:$true] %s974_s20 }
  0xbe   : > { %1153 = vmatpush1.msk.msra.mxu0 %vm462_vm0, %v378_v2  ;;  %s2349_s14 = sld [smem:[#allocation26_spill]]  ;;  %s960_s7 = scalar_lea.sflag [#allocation5], %s2031_s19 }
  0xbf   : > { %s1554_s15 = scalar_lea.vmem %s2219_s20, 512  ;;  %s1696_s26 = smov [#allocation11]  }
  0xc0   : > { %p1555_p6 = scmp.ne.s32.totalorder %s2219_s20, %s1554_s15 }
  0xc1   : > { %s1171_s17 = sshll.u32 %s2346_s10, 3 }
  0xc2   : > { %s971_s12 = sadd.s32 %s2347_s18, %s1171_s17 }
  0xc3   : > { %s1172_s2 = sshll.u32 %s971_s12, 7  ;;  %p2350_p4 = scmp.ne.s32.totalorder %s2348_s1, 0 }
  0xc4   : > { %s2224_s0 = scalar_lea.hbm %s2349_s14, %s1172_s2 }
  0xc5   : > { %p1556_p1 = pnand %p1555_p6, %p2350_p4 }
  0xc7   : > { %p1557_p0 = pneg %p1556_p1 }
 0x13b   : > { %v395_v4 = vpop.trf.xlu0 }
 0x13c   : > { %1154 = vmatmul.mubr.msk.f32.vlgmr.msra.gmra.mrb[0].mxu0 %vm413_vm1, %v395_v4  ;;  %v1695_v4 = vmov 1.0  }
 0x13d   : > { %537 = vmatprep.mubr.f32.mxu0 %v1694_v0 }
 0x13f   : > { %v396_v5 = vpop.trf.xlu0 }
 0x140   : > { %1155 = vmatmul.mubr.msk.f32.gmra.mrb[2].mxu0 %vm413_vm1, %v396_v5  ;;  %v773_v5 = vld [vmem:[%s2046_s11 + $0x8] sm:$0xff] }
 0x141   : > { %543 = vmatprep.mubr.f32.mxu0 %v1694_v0  ;;  %844 = vmatprep.mubr.f32.mxu1 %v773_v5 }
 0x143   : > { %v397_v6 = vpop.trf.xlu0 }
 0x144   : > { %1156 = vmatmul.mubr.msk.f32.gmra.mrb[4].mxu0 %vm413_vm1, %v397_v6 }
 0x145   : > { %549 = vmatprep.mubr.f32.mxu0 %v1694_v0 }
 0x147   : > { %v398_v7 = vpop.trf.xlu0 }
 0x148   : > { %1157 = vmatmul.mubr.msk.f32.gmra.mrb[6].mxu0 %vm413_vm1, %v398_v7 }
 0x149   : > { %555 = vmatprep.mubr.f32.mxu0 %v1694_v0 }
 0x14b   : > { %v399_v8 = vpop.trf.xlu0 }
 0x14c   : > { %1158 = vmatmul.mubr.msk.f32.gmra.mrb[8].mxu0 %vm413_vm1, %v399_v8 }
 0x14d   : > { %561 = vmatprep.mubr.f32.mxu0 %v1694_v0 }
 0x14f   : > { %v400_v9 = vpop.trf.xlu0 }
 0x150   : > { %1159 = vmatmul.mubr.msk.f32.gmra.mrb[10].mxu0 %vm413_vm1, %v400_v9 }
 0x151   : > { %567 = vmatprep.mubr.f32.mxu0 %v1694_v0 }
 0x153   : > { %v401_v10 = vpop.trf.xlu0 }
 0x154   : > { %1160 = vmatmul.mubr.msk.f32.gmra.mrb[12].mxu0 %vm413_vm1, %v401_v10 }
 0x155   : > { %573 = vmatprep.mubr.f32.mxu0 %v1694_v0 }
 0x157   : > { %v402_v11 = vpop.trf.xlu0 }
 0x158   : > { %1161 = vmatmul.mubr.msk.f32.gmra.mrb[14].mxu0 %vm413_vm1, %v402_v11 }
 0x159   : > { %579 = vmatprep.mubr.f32.mxu0 %v1694_v0 }
 0x15b   : > { %v403_v12 = vpop.trf.xlu0 }
 0x15c   : > { %1162 = vmatmul.mubr.msk.f32.gmra.mrb[16].mxu0 %vm413_vm1, %v403_v12 }
 0x15d   : > { %585 = vmatprep.mubr.f32.mxu0 %v1694_v0 }
 0x15f   : > { %v404_v13 = vpop.trf.xlu0 }
 0x160   : > { %1163 = vmatmul.mubr.msk.f32.gmra.mrb[18].mxu0 %vm413_vm1, %v404_v13 }
 0x161   : > { %591 = vmatprep.mubr.f32.mxu0 %v1694_v0 }
 0x163   : > { %v405_v14 = vpop.trf.xlu0 }
 0x164   : > { %1164 = vmatmul.mubr.msk.f32.gmra.mrb[20].mxu0 %vm413_vm1, %v405_v14 }
 0x165   : > { %597 = vmatprep.mubr.f32.mxu0 %v1694_v0 }
 0x167   : > { %v406_v15 = vpop.trf.xlu0 }
 0x168   : > { %1165 = vmatmul.mubr.msk.f32.gmra.mrb[22].mxu0 %vm413_vm1, %v406_v15 }
 0x169   : > { %603 = vmatprep.mubr.f32.mxu0 %v1694_v0 }
 0x16b   : > { %v407_v16 = vpop.trf.xlu0 }
 0x16c   : > { %1166 = vmatmul.mubr.msk.f32.gmra.mrb[24].mxu0 %vm413_vm1, %v407_v16 }
 0x16d   : > { %609 = vmatprep.mubr.f32.mxu0 %v1694_v0 }
 0x16f   : > { %v408_v17 = vpop.trf.xlu0 }
 0x170   : > { %1167 = vmatmul.mubr.msk.f32.gmra.mrb[26].mxu0 %vm413_vm1, %v408_v17 }
 0x171   : > { %615 = vmatprep.mubr.f32.mxu0 %v1694_v0 }
 0x173   : > { %v409_v18 = vpop.trf.xlu0 }
 0x174   : > { %1168 = vmatmul.mubr.msk.f32.gmra.mrb[28].mxu0 %vm413_vm1, %v409_v18 }
 0x175   : > { %621 = vmatprep.mubr.f32.mxu0 %v1694_v0 }
 0x177   : > { %v410_v19 = vpop.trf.xlu0 }
 0x178   : > { %1169 = vmatmul.mubr.msk.f32.gmra.mrb[30].mxu0 %vm413_vm1, %v410_v19 }
 0x179   : > { %929 = vmatprep.mubr.f32.mxu0 %v1695_v4 }
 0x20f   : > { %v2073_v20 = vpop.f32.mrb[0].mxu0 }
 0x210   : > { %v2075_v21 = vpop.f32.mrb[1].mxu0 }
 0x211   : > { %v628_v22 = vmax.f32 %v2073_v20, %v2075_v21 }
 0x213   : > { %629 = vmax.xlane.f32.xlu0 %v628_v22  ;;  %v2079_v23 = vpop.f32.mrb[2].mxu0 }
 0x214   : > { %v2081_v24 = vpop.f32.mrb[3].mxu0 }
 0x215   : > { %v631_v25 = vmax.f32 %v2079_v23, %v2081_v24 }
 0x217   : > { %632 = vmax.xlane.f32.xlu1 %v631_v25  ;;  %v2085_v26 = vpop.f32.mrb[4].mxu0 }
 0x218   : > { %v2087_v27 = vpop.f32.mrb[5].mxu0 }
 0x219   : > { %v634_v28 = vmax.f32 %v2085_v26, %v2087_v27 }
 0x21b   : > { %635 = vmax.xlane.f32.xlu1 %v634_v28  ;;  %v2091_v29 = vpop.f32.mrb[6].mxu0 }
 0x21c   : > { %v2093_v30 = vpop.f32.mrb[7].mxu0 }
 0x21d   : > { %v637_v31 = vmax.f32 %v2091_v29, %v2093_v30 }
 0x21f   : > { %638 = vmax.xlane.f32.xlu1 %v637_v31  ;;  %v2097_v32 = vpop.f32.mrb[8].mxu0 }
 0x220   : > { %v2099_v33 = vpop.f32.mrb[9].mxu0 }
 0x221   : > { %v640_v34 = vmax.f32 %v2097_v32, %v2099_v33 }
 0x223   : > { %641 = vmax.xlane.f32.xlu1 %v640_v34  ;;  %v2103_v35 = vpop.f32.mrb[10].mxu0 }
 0x224   : > { %v2105_v36 = vpop.f32.mrb[11].mxu0 }
 0x225   : > { %v643_v37 = vmax.f32 %v2103_v35, %v2105_v36 }
 0x227   : > { %644 = vmax.xlane.f32.xlu1 %v643_v37  ;;  %v2109_v38 = vpop.f32.mrb[12].mxu0 }
 0x228   : > { %v2111_v39 = vpop.f32.mrb[13].mxu0 }
 0x229   : > { %v646_v40 = vmax.f32 %v2109_v38, %v2111_v39 }
 0x22b   : > { %647 = vmax.xlane.f32.xlu1 %v646_v40  ;;  %v2115_v41 = vpop.f32.mrb[14].mxu0 }
 0x22c   : > { %v2117_v42 = vpop.f32.mrb[15].mxu0 }
 0x22d   : > { %v649_v43 = vmax.f32 %v2115_v41, %v2117_v42 }
 0x22f   : > { %650 = vmax.xlane.f32.xlu1 %v649_v43  ;;  %v2121_v44 = vpop.f32.mrb[16].mxu0 }
 0x230   : > { %v2123_v45 = vpop.f32.mrb[17].mxu0 }
 0x231   : > { %v652_v46 = vmax.f32 %v2121_v44, %v2123_v45 }
 0x233   : > { %653 = vmax.xlane.f32.xlu1 %v652_v46  ;;  %v2127_v47 = vpop.f32.mrb[18].mxu0 }
 0x234   : > { %v2129_v48 = vpop.f32.mrb[19].mxu0 }
 0x235   : > { %v655_v49 = vmax.f32 %v2127_v47, %v2129_v48 }
 0x237   : > { %656 = vmax.xlane.f32.xlu1 %v655_v49  ;;  %v2133_v50 = vpop.f32.mrb[20].mxu0 }
 0x238   : > { %v2135_v51 = vpop.f32.mrb[21].mxu0 }
 0x239   : > { %v658_v52 = vmax.f32 %v2133_v50, %v2135_v51 }
 0x23b   : > { %659 = vmax.xlane.f32.xlu1 %v658_v52  ;;  %v2139_v53 = vpop.f32.mrb[22].mxu0 }
 0x23c   : > { %v2141_v54 = vpop.f32.mrb[23].mxu0 }
 0x23d   : > { %v661_v55 = vmax.f32 %v2139_v53, %v2141_v54 }
 0x23f   : > { %662 = vmax.xlane.f32.xlu1 %v661_v55  ;;  %v2145_v56 = vpop.f32.mrb[24].mxu0 }
 0x240   : > { %v2147_v57 = vpop.f32.mrb[25].mxu0 }
 0x241   : > { %v664_v58 = vmax.f32 %v2145_v56, %v2147_v57 }
 0x243   : > { %665 = vmax.xlane.f32.xlu1 %v664_v58  ;;  %v2151_v59 = vpop.f32.mrb[26].mxu0 }
 0x244   : > { %v2153_v60 = vpop.f32.mrb[27].mxu0 }
 0x245   : > { %v667_v61 = vmax.f32 %v2151_v59, %v2153_v60 }
 0x247   : > { %668 = vmax.xlane.f32.xlu1 %v667_v61  ;;  %v2157_v62 = vpop.f32.mrb[28].mxu0 }
 0x248   : > { %v2159_v63 = vpop.f32.mrb[29].mxu0 }
 0x249   : > { %v670_v0 = vmax.f32 %v2157_v62, %v2159_v63 }
 0x24b   : > { %671 = vmax.xlane.f32.xlu1 %v670_v0  ;;  %v2163_v1 = vpop.f32.mrb[30].mxu0 }
 0x24c   : > { %v2165_v2 = vpop.f32.mrb[31].mxu0 }
 0x24d   : > { %v673_v3 = vmax.f32 %v2163_v1, %v2165_v2 }
 0x24f   : > { %674 = vmax.xlane.f32.xlu1 %v673_v3 }
 0x2a0   : > { %v630_v6 = vpop.xlane.xlu0 %629 }
 0x2a1   : > { %v676_v7 = vsub.f32 %v2073_v20, %v630_v6  ;;  %v677_v8 = vsub.f32 %v2075_v21, %v630_v6 }
 0x2a3   : > { %v708_v9 = vmul.f32 1.442695, %v676_v7  ;;  %v710_v10 = vmul.f32 1.442695, %v677_v8 }
 0x2a4   : > { %v633_v11 = vpop.xlane.xlu1 %632 }
 0x2a5   : > { %v678_v12 = vsub.f32 %v2079_v23, %v633_v11  ;;  %v679_v13 = vsub.f32 %v2081_v24, %v633_v11  ;;  %1368 = vpow2.f32 %v708_v9 }
 0x2a6   : > { %1370 = vpow2.f32 %v710_v10 }
 0x2a7   : > { %v712_v14 = vmul.f32 1.442695, %v678_v12  ;;  %v714_v15 = vmul.f32 1.442695, %v679_v13 }
 0x2a8   : > { %v636_v16 = vpop.xlane.xlu1 %635 }
 0x2a9   : > { %1372 = vpow2.f32 %v712_v14  ;;  %v680_v17 = vsub.f32 %v2085_v26, %v636_v16  ;;  %v681_v18 = vsub.f32 %v2087_v27, %v636_v16 }
 0x2aa   : > { %1374 = vpow2.f32 %v714_v15 }
 0x2ab   : > { %v716_v19 = vmul.f32 1.442695, %v680_v17  ;;  %v718_v20 = vmul.f32 1.442695, %v681_v18 }
 0x2ac   : > { %v639_v21 = vpop.xlane.xlu1 %638 }
 0x2ad   : > { %v682_v22 = vsub.f32 %v2091_v29, %v639_v21  ;;  %v683_v23 = vsub.f32 %v2093_v30, %v639_v21  ;;  %1376 = vpow2.f32 %v716_v19 }
 0x2ae   : > { %1378 = vpow2.f32 %v718_v20 }
 0x2af   : > { %v720_v24 = vmul.f32 1.442695, %v682_v22  ;;  %v722_v25 = vmul.f32 1.442695, %v683_v23  ;;  %v1369_v31 = vpop.eup %1368 }
 0x2b0   : > { %v642_v28 = vpop.xlane.xlu1 %641  ;;  %v1371_v27 = vpop.eup %1370 }
 0x2b1   : > { %1380 = vpow2.f32 %v720_v24  ;;  %v684_v34 = vsub.f32 %v2097_v32, %v642_v28  ;;  %v685_v26 = vsub.f32 %v2099_v33, %v642_v28 }
 0x2b2   : > { %1382 = vpow2.f32 %v722_v25 }
 0x2b3   : > { %v1373_v37 = vpop.eup %1372  ;;  %v724_v40 = vmul.f32 1.442695, %v684_v34  ;;  %v726_v46 = vmul.f32 1.442695, %v685_v26 }
 0x2b4   : > { %v1375_v43 = vpop.eup %1374  ;;  %v645_v29 = vpop.xlane.xlu1 %644  ;;  %v1179_v49 = vpack.c.bf16 %v1373_v37, %v1369_v31 }
 0x2b5   : > { %v686_v30 = vsub.f32 %v2103_v35, %v645_v29  ;;  %v687_v52 = vsub.f32 %v2105_v36, %v645_v29  ;;  %v1177_v55 = vpack.c.bf16 %v1375_v43, %v1371_v27  ;;  %1384 = vpow2.f32 %v724_v40 }
 0x2b6   : > { %1386 = vpow2.f32 %v726_v46 }
 0x2b7   : > { %v728_v58 = vmul.f32 1.442695, %v686_v30  ;;  %v730_v61 = vmul.f32 1.442695, %v687_v52  ;;  %1178 = vmatprep.subr.bf16.mxu1 %v1177_v55  ;;  %1210 = vmatprep.subr.bf16.mxu0 %v1177_v55  ;;  %v1377_v33 = vpop.eup %1376 }
 0x2b8   : > { %1180 = vmatpush1.bf16.xpose.msra.mxu1 %v1179_v49  ;;  %1212 = vmatpush1.bf16.xpose.msra.mxu0 %v1179_v49  ;;  %v648_v32 = vpop.xlane.xlu1 %647  ;;  %v1379_v5 = vpop.eup %1378 }
 0x2b9   : > { %1388 = vpow2.f32 %v728_v58  ;;  %v688_v0 = vsub.f32 %v2109_v38, %v648_v32  ;;  %v689_v3 = vsub.f32 %v2111_v39, %v648_v32 }
 0x2ba   : > { %1390 = vpow2.f32 %v730_v61 }
 0x2bb   : > { %v1381_v35 = vpop.eup %1380  ;;  %v732_v36 = vmul.f32 1.442695, %v688_v0  ;;  %v734_v7 = vmul.f32 1.442695, %v689_v3 }
 0x2bc   : > { %v1383_v6 = vpop.eup %1382  ;;  %v651_v8 = vpop.xlane.xlu1 %650  ;;  %v1183_v9 = vpack.c.bf16 %v1381_v35, %v1377_v33 }
 0x2bd   : > { %v690_v10 = vsub.f32 %v2115_v41, %v651_v8  ;;  %v691_v11 = vsub.f32 %v2117_v42, %v651_v8  ;;  %v1181_v12 = vpack.c.bf16 %v1383_v6, %v1379_v5  ;;  %1392 = vpow2.f32 %v732_v36 }
 0x2be   : > { %1394 = vpow2.f32 %v734_v7 }
 0x2bf   : > { %v736_v13 = vmul.f32 1.442695, %v690_v10  ;;  %v738_v14 = vmul.f32 1.442695, %v691_v11  ;;  %1182 = vmatprep.subr.bf16.mxu1 %v1181_v12  ;;  %1214 = vmatprep.subr.bf16.mxu0 %v1181_v12  ;;  %v1385_v39 = vpop.eup %1384 }
 0x2c0   : > { %1184 = vmatpush1.bf16.xpose.msra.mxu1 %v1183_v9  ;;  %1216 = vmatpush1.bf16.xpose.msra.mxu0 %v1183_v9  ;;  %v654_v38 = vpop.xlane.xlu1 %653  ;;  %v1387_v17 = vpop.eup %1386 }
 0x2c1   : > { %1396 = vpow2.f32 %v736_v13  ;;  %v692_v15 = vsub.f32 %v2121_v44, %v654_v38  ;;  %v693_v16 = vsub.f32 %v2123_v45, %v654_v38 }
 0x2c2   : > { %1398 = vpow2.f32 %v738_v14 }
 0x2c3   : > { %v1389_v41 = vpop.eup %1388  ;;  %v740_v42 = vmul.f32 1.442695, %v692_v15  ;;  %v742_v19 = vmul.f32 1.442695, %v693_v16 }
 0x2c4   : > { %v1391_v18 = vpop.eup %1390  ;;  %v657_v20 = vpop.xlane.xlu1 %656  ;;  %v1187_v21 = vpack.c.bf16 %v1389_v41, %v1385_v39 }
 0x2c5   : > { %v694_v22 = vsub.f32 %v2127_v47, %v657_v20  ;;  %v695_v23 = vsub.f32 %v2129_v48, %v657_v20  ;;  %v1185_v24 = vpack.c.bf16 %v1391_v18, %v1387_v17  ;;  %1400 = vpow2.f32 %v740_v42 }
 0x2c6   : > { %1402 = vpow2.f32 %v742_v19 }
 0x2c7   : > { %v744_v25 = vmul.f32 1.442695, %v694_v22  ;;  %v746_v28 = vmul.f32 1.442695, %v695_v23  ;;  %1186 = vmatprep.subr.bf16.mxu1 %v1185_v24  ;;  %1218 = vmatprep.subr.bf16.mxu0 %v1185_v24  ;;  %v1393_v45 = vpop.eup %1392  ;;  %v772_v24 = vld [vmem:[%s2046_s11] sm:$0xff] }
 0x2c8   : > { %1188 = vmatpush1.bf16.xpose.msra.mxu1 %v1187_v21  ;;  %1220 = vmatpush1.bf16.xpose.msra.mxu0 %v1187_v21  ;;  %v660_v44 = vpop.xlane.xlu1 %659  ;;  %v1395_v26 = vpop.eup %1394 }
 0x2c9   : > { %1404 = vpow2.f32 %v744_v25  ;;  %v696_v31 = vsub.f32 %v2133_v50, %v660_v44  ;;  %v697_v34 = vsub.f32 %v2135_v51, %v660_v44  ;;  %v775_v25 = vld [vmem:[%s2046_s11 + $0x18] sm:$0xff]  ;;  %v777_v44 = vld [vmem:[%s2046_s11 + $0x28] sm:$0xff] }
 0x2ca   : > { %1406 = vpow2.f32 %v746_v28  ;;  %v774_v28 = vld [vmem:[%s2046_s11 + $0x10] sm:$0xff] }
 0x2cb   : > { %v1397_v47 = vpop.eup %1396  ;;  %v748_v48 = vmul.f32 1.442695, %v696_v31  ;;  %v750_v37 = vmul.f32 1.442695, %v697_v34  ;;  %v779_v31 = vld [vmem:[%s2046_s11 + $0x38] sm:$0xff]  ;;  %v778_v34 = vld [vmem:[%s2046_s11 + $0x30] sm:$0xff] }
 0x2cc   : > { %v1399_v27 = vpop.eup %1398  ;;  %v663_v40 = vpop.xlane.xlu1 %662  ;;  %v1191_v43 = vpack.c.bf16 %v1397_v47, %v1393_v45  ;;  %v776_v45 = vld [vmem:[%s2046_s11 + $0x20] sm:$0xff]  ;;  %s1558_s11 = sshll.u32 %s1696_s26, 4  ;;  %s1559_s11 = int_to_ptr.vmem [resolvable:$false] %s1558_s11 }
 0x2cd   : > { %v698_v46 = vsub.f32 %v2139_v53, %v663_v40  ;;  %v699_v29 = vsub.f32 %v2141_v54, %v663_v40  ;;  %v1189_v49 = vpack.c.bf16 %v1399_v27, %v1395_v26  ;;  %1408 = vpow2.f32 %v748_v48  ;;  %s1560_s9 = scalar_lea.vmem %s1559_s11, 1024  ;;  %p1561_p12 = scmp.lt.s32.totalorder %s2219_s20, %s1559_s11 }
 0x2ce   : > { %1410 = vpow2.f32 %v750_v37  ;;  %v939_v27 = vlaneseq  ;;  %p1562_p13 = scmp.lt.s32.totalorder %s1560_s9, %s1554_s15 }
 0x2cf   : > { %v752_v30 = vmul.f32 1.442695, %v698_v46  ;;  %v754_v52 = vmul.f32 1.442695, %v699_v29  ;;  %1190 = vmatprep.subr.bf16.mxu1 %v1189_v49  ;;  %1222 = vmatprep.subr.bf16.mxu0 %v1189_v49  ;;  %v1401_v51 = vpop.eup %1400  ;;  %v937_v29 = vstv %s935_s21 }
 0x2d0   : > { %1192 = vmatpush1.bf16.xpose.msra.mxu1 %v1191_v43  ;;  %1224 = vmatpush1.bf16.xpose.msra.mxu0 %v1191_v43  ;;  %v666_v50 = vpop.xlane.xlu1 %665  ;;  %v1403_v61 = vpop.eup %1402  ;;  %v940_v43 = vshrl.u32 %v939_v27, 7  ;;  %p1563_p2 = por %p1562_p13, %p1561_p12 }
 0x2d1   : > { %1412 = vpow2.f32 %v752_v30  ;;  %v700_v55 = vsub.f32 %v2145_v56, %v666_v50  ;;  %v701_v58 = vsub.f32 %v2147_v57, %v666_v50 }
 0x2d2   : > { %1414 = vpow2.f32 %v754_v52  ;;  %v941_v30 = vsub.s32 0, %v940_v43  ;;  %p1564_p7 = pnand %p1563_p2, %p1557_p0 }
 0x2d3   : > { %v1405_v53 = vpop.eup %1404  ;;  %v756_v54 = vmul.f32 1.442695, %v700_v55  ;;  %v758_v33 = vmul.f32 1.442695, %v701_v58 }
 0x2d4   : > { %v1407_v32 = vpop.eup %1406  ;;  %v669_v0 = vpop.xlane.xlu1 %668  ;;  %v1195_v3 = vpack.c.bf16 %v1405_v53, %v1401_v51  ;;  %v948_v53 = vld [vmem:[%s2051_s30 + $0x8] sm:$0xff] }
 0x2d5   : > { %v702_v5 = vsub.f32 %v2151_v59, %v669_v0  ;;  %v703_v35 = vsub.f32 %v2153_v60, %v669_v0  ;;  %v1193_v36 = vpack.c.bf16 %v1407_v32, %v1403_v61  ;;  %1416 = vpow2.f32 %v756_v54  ;;  %v947_v61 = vld [vmem:[%s2051_s30] sm:$0xff]  ;;  %v949_v54 = vld [vmem:[%s2051_s30 + $0x10] sm:$0xff]  ;;  %v950_v32 = vld [vmem:[%s2051_s30 + $0x18] sm:$0xff] }
 0x2d6   : > { %1418 = vpow2.f32 %v758_v33 }
 0x2d7   : > { %v760_v6 = vmul.f32 1.442695, %v702_v5  ;;  %v762_v7 = vmul.f32 1.442695, %v703_v35  ;;  %1194 = vmatprep.subr.bf16.mxu1 %v1193_v36  ;;  %1226 = vmatprep.subr.bf16.mxu0 %v1193_v36  ;;  %v1409_v57 = vpop.eup %1408 }
 0x2d8   : > { %1196 = vmatpush1.bf16.xpose.msra.mxu1 %v1195_v3  ;;  %1228 = vmatpush1.bf16.xpose.msra.mxu0 %v1195_v3  ;;  %v672_v56 = vpop.xlane.xlu1 %671  ;;  %v1411_v10 = vpop.eup %1410 }
 0x2d9   : > { %1420 = vpow2.f32 %v760_v6  ;;  %v704_v8 = vsub.f32 %v2157_v62, %v672_v56  ;;  %v705_v9 = vsub.f32 %v2159_v63, %v672_v56 }
 0x2da   : > { %1422 = vpow2.f32 %v762_v7 }
 0x2db   : > { %v1413_v59 = vpop.eup %1412  ;;  %v764_v60 = vmul.f32 1.442695, %v704_v8  ;;  %v766_v12 = vmul.f32 1.442695, %v705_v9 }
 0x2dc   : > { %v1415_v11 = vpop.eup %1414  ;;  %v675_v13 = vpop.xlane.xlu1 %674  ;;  %v1199_v14 = vpack.c.bf16 %v1413_v59, %v1409_v57 }
 0x2dd   : > { %v706_v38 = vsub.f32 %v2163_v1, %v675_v13  ;;  %v707_v39 = vsub.f32 %v2165_v2, %v675_v13  ;;  %v1197_v15 = vpack.c.bf16 %v1415_v11, %v1411_v10  ;;  %1424 = vpow2.f32 %v764_v60 }
 0x2de   : > { %1426 = vpow2.f32 %v766_v12 }
 0x2df   : > { %v768_v16 = vmul.f32 1.442695, %v706_v38  ;;  %v770_v17 = vmul.f32 1.442695, %v707_v39  ;;  %1198 = vmatprep.subr.bf16.mxu1 %v1197_v15  ;;  %1230 = vmatprep.subr.bf16.mxu0 %v1197_v15  ;;  %v1417_v62 = vpop.eup %1416 }
 0x2e0   : > { %1200 = vmatpush1.bf16.xpose.msra.mxu1 %v1199_v14  ;;  %1232 = vmatpush1.bf16.xpose.msra.mxu0 %v1199_v14  ;;  %v1419_v63 = vpop.eup %1418 }
 0x2e1   : > { %1428 = vpow2.f32 %v768_v16 }
 0x2e2   : > { %1430 = vpow2.f32 %v770_v17 }
 0x2e3   : > { %v1421_v41 = vpop.eup %1420 }
 0x2e4   : > { %v1423_v42 = vpop.eup %1422  ;;  %v1203_v18 = vpack.c.bf16 %v1421_v41, %v1417_v62 }
 0x2e5   : > { %v1201_v1 = vpack.c.bf16 %v1423_v42, %v1419_v63 }
 0x2e7   : > { %1202 = vmatprep.subr.bf16.mxu1 %v1201_v1  ;;  %1234 = vmatprep.subr.bf16.mxu0 %v1201_v1  ;;  %v1425_v2 = vpop.eup %1424 }
 0x2e8   : > { %1204 = vmatpush1.bf16.xpose.msra.mxu1 %v1203_v18  ;;  %1236 = vmatpush1.bf16.xpose.msra.mxu0 %v1203_v18  ;;  %v1427_v19 = vpop.eup %1426 }
 0x2eb   : > { %v1429_v20 = vpop.eup %1428 }
 0x2ec   : > { %v1431_v21 = vpop.eup %1430  ;;  %v1207_v22 = vpack.c.bf16 %v1429_v20, %v1425_v2 }
 0x2ed   : > { %v1205_v23 = vpack.c.bf16 %v1431_v21, %v1427_v19 }
 0x2ef   : > { %1206 = vmatprep.subr.bf16.mxu1 %v1205_v23  ;;  %1238 = vmatprep.subr.bf16.mxu0 %v1205_v23 }
 0x2f0   : > { %1208 = vmatpush1.bf16.xpose.msra.mxu1 %v1207_v22  ;;  %1240 = vmatpush1.bf16.xpose.msra.mxu0 %v1207_v22 }
 0x2f7   : > { %930 = vmatmul.mubr.f32.vlgmr.msra.gmra.mrb[32].mxu0 %v1695_v4  ;;  %845 = vmatmul.mubr.f32.vlgmr.msra.gmra.mrb[0].mxu1 %v772_v24 }
 0x2f8   : > { %849 = vmatprep.mubr.f32.mxu1 %v775_v25 }
 0x2fb   : > { %850 = vmatmul.mubr.f32.gmra.mrb[2].mxu1 %v774_v28 }
 0x2fc   : > { %854 = vmatprep.mubr.f32.mxu1 %v777_v44 }
 0x2ff   : > { %855 = vmatmul.mubr.f32.gmra.mrb[4].mxu1 %v776_v45 }
 0x300   : > { %859 = vmatprep.mubr.f32.mxu1 %v779_v31 }
 0x303   : > { %860 = vmatmul.mubr.f32.gmra.mrb[6].mxu1 %v778_v34 }
 0x3ca   : > { %v931_v26 = vpop.f32.mrb[32].mxu0  ;;  %v846_v47 = vpop.f32.mrb[0].mxu1 }
 0x3cb   : > { %1432 = vrcp.f32 %v931_v26  ;;  %v933_v48 = vpop.f32.mrb[33].mxu0  ;;  %v848_v4 = vpop.f32.mrb[1].mxu1 }
 0x3ce   : > { %v851_v37 = vpop.f32.mrb[2].mxu1 }
 0x3cf   : > { %v853_v40 = vpop.f32.mrb[3].mxu1 }
 0x3d2   : > { %v856_v46 = vpop.f32.mrb[4].mxu1 }
 0x3d3   : > { %v858_v49 = vpop.f32.mrb[5].mxu1 }
 0x3d5   : > { %v1433_v52 = vpop.eup %1432 }
 0x3d6   : > { %v938_v50 = vmul.f32 %v1433_v52, %v937_v29  ;;  %v861_v51 = vpop.f32.mrb[6].mxu1 }
 0x3d7   : > { %v863_v55 = vpop.f32.mrb[7].mxu1 }
 0x3d8   : > { %v942_v58 = vrot.slane %v938_v50, %v941_v30 }
 0x3da   : > { %v943_v33 = vmul.f32 %v942_v58, %v846_v47  ;;  %v944_v0 = vmul.f32 %v942_v58, %v851_v37  ;;  %v945_v3 = vmul.f32 %v942_v58, %v856_v46  ;;  %v946_v5 = vmul.f32 %v942_v58, %v861_v51 }
 0x3dc   : > { %v951_v35 = vadd.f32 %v947_v61, %v943_v33  ;;  %v952_v36 = vadd.f32 %v948_v53, %v944_v0  ;;  %v953_v6 = vadd.f32 %v949_v54, %v945_v3  ;;  %v954_v7 = vadd.f32 %v950_v32, %v946_v5 }
 0x3de   : > { %955 = vst [vmem:[%s376_s16] sm:$0xff] %v951_v35  ;;  %956 = vst [vmem:[%s376_s16 + $0x8] sm:$0xff] %v952_v36 }
 0x3df   : > { %957 = vst [vmem:[%s376_s16 + $0x10] sm:$0xff] %v953_v6  ;;  %958 = vst [vmem:[%s376_s16 + $0x18] sm:$0xff] %v954_v7 }
 0x3e0   : > { %1567 = shalt.err (!%p1564_p7)
}
 0x3e1   : > { %s1568_s30 = scalar_lea.hbm %s2224_s0, 512  ;;  %s1572_s21 = scalar_lea.hbm %s2349_s14, 2048 }
 0x3e2   : > { %p1569_p8 = scmp.ne.s32.totalorder %s2224_s0, %s1568_s30  ;;  %p1573_p3 = scmp.lt.u32.totalorder %s2224_s0, %s2349_s14 }
 0x3e3   : > { %p1574_p5 = scmp.lt.u32.totalorder %s1572_s21, %s1568_s30  ;;  %p1576_p6 = scmp.lt.u32.totalorder %s1568_s30, %s2224_s0 }
 0x3e4   : > { %p1570_p9 = pnand %p1569_p8, %p2350_p4 }
 0x3e5   : > { %p1575_p10 = por %p1574_p5, %p1573_p3 }
 0x3e6   : > { %p1571_p11 = pneg %p1570_p9 }
 0x3e7   : > { %p1577_p1 = por %p1576_p6, %p1575_p10 }
 0x3e9   : > { %p1578_p0 = pnand %p1577_p1, %p1571_p11 }
 0x3eb   : > { %1581 = shalt.err (!%p1578_p0)
}
 0x3ec   : > { %s1697_s16 = smov 128   ;;  %s1698_s2 = smov 256  }
 0x3ed   : > { %s1699_s8 = smov 8  }
 0x3ee   : > { %1249 = dma.vmem_to_hbm [thread:$0]  (%p2350_p4), %s2219_s20, 512, %s2224_s0, %s960_s7, %s1697_s16, %s1698_s2, %s1699_s8  }
 0x3ef PF: > { %s2351_s13 = sld [smem:[#allocation17_spill]]  ;;  %p1269_p12 = scmp.ge.s32.totalorder %s1684_s29, 2 }
 0x3f0   : > { %p2352_p13 = scmp.ne.s32.totalorder %s2331_s6, 0 }
 0x3f2   : > { %p1265_p2 = pnand %p1269_p12, %p2352_p13 }
 0x3f5   : > { %s989_s15 = sand.u32 1, %s2351_s13  }
 0x3f6   : > { %s990_s26 = scalar_lea.sflag [#allocation5], %s989_s15 }
 0x3f7   : > { %1639 = dma.done.wait (!%p1265_p2), %s990_s26, 512  }
 0x3f8   : > { %1641 = vsyncadd (!%p1265_p2), %s990_s26, 4294966784  ;;  %s28_s29 = sadd.s32 1, %s1684_s29   ;;  %s2353_s20 = sld [smem:[#allocation16_spill]] }
 0x3f9   : > { %p25_p7 = scmp.ge.s32.totalorder %s28_s29, 6   ;;  %s2354_s19 = sld [smem:[#allocation21_spill]] }
 0x3fa   : > { %s2355_s1 = sld [smem:[#allocation22_spill]]  ;;  %s2356_s21 = smov %s1652_s22 }
 0x3fb   : > { %s2357_s22 = smov %s1905_s23  ;;  %s2358_s23 = smov %s1660_s24 }
 0x3fc   : > { %s2359_s24 = smov %s1664_s25  ;;  %s2360_s25 = smov %s1908_s5 }
 0x3fd   : > { %s2361_s0 = smov %s1676_s27  ;;  %s2362_s26 = smov %s1680_s28 }
 0x3fe   :  { %27 = sbr.rel (!%p25_p7) target bundleno = 18 (0x12), region = 122 }
 0x3ff   : > { %s2363_s27 = smov %s2354_s19 }
 0x400   : > { %s2364_s28 = smov %s2355_s1 }
 0x405   :  { %995 = vsyncpa [#allocation4], 1 }
 0x406   :  { %997 = vsyncpa [#allocation4 + $0x1], 1 }
 0x407   :  { %998 = vsyncpa [#allocation7], 1 }
 0x408   :  { %1000 = vsyncpa [#allocation7 + $0x1], 1 }
 0x409   :  { %1001 = vsyncpa [#allocation10], 1 }
 0x40a   :  { %1003 = vsyncpa [#allocation10 + $0x1], 1 }
 0x40b   :  { %1004 = vsyncpa [#allocation5], 1 }
 0x40c   :  { %1006 = vsyncpa [#allocation5 + $0x1], 1 }

</bundles_post_ra>
